<compile_context>
chip_gen: v7x
topology: tpu7x:2x2x1
jax: 0.10.0
libtpu: 0.0.40
codegen_flags: <defaults>
</compile_context>

<pallas_src>
import math
import numpy as np
import jax
import jax.numpy as jnp
from jax.experimental import pallas as pl
from jax.experimental.pallas import tpu as pltpu

# ----------------------------------------------------------------------------
# Small problem configuration (consistent with the module's constructor)
# ----------------------------------------------------------------------------
B = 2
IN_CHANNELS = 4
OUT_CHANNELS = 6
GROUPS = 1
IN_SHAPE = (16, 32)     # (nlat_in, nlon_in)
OUT_SHAPE = (8, 16)     # (nlat_out, nlon_out); nlon_in % nlon_out == 0
KERNEL_SHAPE = [3]      # isotropic kernel -> kernel_size = ceil(3/2) = 2

NLAT_IN, NLON_IN = IN_SHAPE
NLAT_OUT, NLON_OUT = OUT_SHAPE
PSCALE = NLON_IN // NLON_OUT
KSIZE = math.ceil(KERNEL_SHAPE[0] / 2)
GROUPSIZE = IN_CHANNELS // GROUPS
THETA_CUTOFF = math.pi / float(NLAT_OUT - 1)

HW_IN = NLAT_IN * NLON_IN       # 512  (contraction length)
HW_OUT = NLAT_OUT * NLON_OUT    # 128  (lane-exact output width)


# ----------------------------------------------------------------------------
# Init-time precompute (numpy port of the torch precompute helpers)
# ----------------------------------------------------------------------------
def clenshaw_curtiss_weights(n, a=-1.0, b=1.0):
    assert n > 1
    tcc = np.cos(np.linspace(np.pi, 0, n))
    if n == 2:
        wcc = np.array([1.0, 1.0])
    else:
        n1 = n - 1
        N = np.arange(1, n1, 2)
        l = len(N)
        m = n1 - l
        v = np.concatenate([2.0 / N / (N - 2), np.array([1.0 / N[-1]]), np.zeros(m)])
        v = 0 - v[:-1] - v[-1:0:-1]
        g0 = -np.ones(n1)
        g0[l] = g0[l] + n1
        g0[m] = g0[m] + n1
        g = g0 / (n1 ** 2 - 1 + (n1 % 2))
        wcc = np.fft.ifft(v + g).real
        wcc = np.concatenate((wcc, wcc[:1]))
    xlg = (a + b) / 2 + (b - a) / 2 * tcc
    wlg = (b - a) / 2 * wcc
    return xlg, wlg


def _precompute_latitudes(nlat, grid="equiangular"):
    assert grid == "equiangular"
    xlg, wlg = clenshaw_curtiss_weights(nlat, -1, 1)
    lats = np.flip(np.arccos(xlg)).copy()
    w = np.flip(wlg).copy()
    return lats, w


def _compute_support_vals_isotropic(r, phi, nr, r_cutoff):
    kernel_size = nr // 2 + nr % 2
    ikernel = np.arange(kernel_size).reshape(-1, 1, 1)
    dr = 2 * r_cutoff / (nr + 1)
    if nr % 2 == 1:
        ir = ikernel * dr
    else:
        ir = (ikernel + 0.5) * dr
    cond = (np.abs(r - ir) <= dr) & (r <= r_cutoff)
    iidx = np.argwhere(cond)
    vals = 1 - np.abs(r[iidx[:, 1], iidx[:, 2]] - ir[iidx[:, 0], 0, 0]) / dr
    return iidx, vals


# TODO(synk): anisotropic kernel precompute (_compute_support_vals_anisotropic) and the CUDA
# sparse-contraction path are not ported; they are init-time / backend glue only — the
# forward/kernel math below is identical.


def _normalize_convolution_tensor_s2(psi_idx, psi_vals, in_shape, out_shape, kernel_size,
                                     quad_weights, merge_quadrature=True, eps=1e-9):
    nlat_in, nlon_in = in_shape
    nlat_out, nlon_out = out_shape
    k_idx, row_idx, col_idx = psi_idx
    ilat_in = col_idx // nlon_in
    q = quad_weights.reshape(-1)[ilat_in]
    vals = psi_vals.copy()
    for ik in range(kernel_size):
        for ilat in range(nlat_out):
            mask = (k_idx == ik) & (row_idx == ilat)
            vnorm = np.sum(vals[mask] * q[mask])
            if merge_quadrature:
                vals[mask] = vals[mask] * q[mask] / (vnorm + eps)
            else:
                vals[mask] = vals[mask] / (vnorm + eps)
    return vals


def _precompute_convolution_tensor_s2(in_shape, out_shape, kernel_shape, theta_cutoff):
    nlat_in, nlon_in = in_shape
    nlat_out, nlon_out = out_shape
    lats_in, win = _precompute_latitudes(nlat_in)
    lats_out, _ = _precompute_latitudes(nlat_out)
    lons_in = np.linspace(0, 2 * math.pi, nlon_in + 1)[:-1]

    out_idx, out_vals = [], []
    for t in range(nlat_out):
        alpha = -lats_out[t]
        beta = lons_in                      # (nlon_in,)
        gamma = lats_in.reshape(-1, 1)      # (nlat_in, 1)
        z = -np.cos(beta) * np.sin(alpha) * np.sin(gamma) + np.cos(alpha) * np.cos(gamma)
        x = np.cos(alpha) * np.cos(beta) * np.sin(gamma) + np.cos(gamma) * np.sin(alpha)
        y = np.sin(beta) * np.sin(gamma)
        norm = np.sqrt(x * x + y * y + z * z)
        x, y, z = x / norm, y / norm, z / norm
        theta = np.arccos(np.clip(z, -1.0, 1.0))
        phi = np.arctan2(y, x) + np.pi
        iidx, vals = _compute_support_vals_isotropic(theta, phi, nr=kernel_shape[0],
                                                     r_cutoff=theta_cutoff)
        idx = np.stack([iidx[:, 0], t * np.ones_like(iidx[:, 0]),
                        iidx[:, 1] * nlon_in + iidx[:, 2]], axis=0)
        out_idx.append(idx)
        out_vals.append(vals)

    out_idx = np.concatenate(out_idx, axis=-1).astype(np.int64)
    out_vals = np.concatenate(out_vals, axis=-1).astype(np.float64)
    quad_weights = 2.0 * math.pi * win.reshape(-1, 1) / nlon_in
    out_vals = _normalize_convolution_tensor_s2(out_idx, out_vals, in_shape, out_shape,
                                                KSIZE, quad_weights, merge_quadrature=True)
    return out_idx, out_vals.astype(np.float32)


def build_psi_dense():
    idx, vals = _precompute_convolution_tensor_s2(IN_SHAPE, OUT_SHAPE, KERNEL_SHAPE,
                                                  THETA_CUTOFF)
    psi = np.zeros((KSIZE, NLAT_OUT, NLAT_IN * NLON_IN), np.float32)
    np.add.at(psi, (idx[0], idx[1], idx[2]), vals)   # coalesce duplicates like sparse_coo
    return psi.reshape(KSIZE, NLAT_OUT, NLAT_IN, NLON_IN)


def build_big_psi(psi_dense):
    """Fold the output-longitude roll into the filter tensor (init-time, numpy).

    big[(hi*W + wi), (k*Hout*Wout + h*Wout + wo)] = psi[k, h, hi, (wi - wo*PSCALE) % W]
    so that (x flattened as (B*Cin, Hin*Win)) @ big reproduces the rolled-x DISCO contraction
    for every output longitude wo in a single matmul.
    TODO(synk): at real S2 resolutions, column-tile big_psi over (k,h,wo) with a BlockSpec grid
    (or keep psi sparse) instead of keeping it fully VMEM-resident — v7x has 64 MiB VMEM/TC.
    """
    wo = np.arange(NLON_OUT)
    wi = np.arange(NLON_IN)
    shift_idx = (wi[None, :] - wo[:, None] * PSCALE) % NLON_IN        # (Wout, Win)
    psi_shift = psi_dense[:, :, :, shift_idx]                         # (K, Hout, Hin, Wout, Win)
    big = np.transpose(psi_shift, (2, 4, 0, 1, 3))                    # (Hin, Win, K, Hout, Wout)
    return big.reshape(HW_IN, KSIZE * HW_OUT).astype(np.float32)


# ----------------------------------------------------------------------------
# Pallas kernel: single invocation — one MXU contraction + fused VPU mixing + bias
# ----------------------------------------------------------------------------
def _disco_s2_kernel(x_ref, psi_ref, w_ref, b_ref, o_ref):
    # x_ref  : (B*Cin, Hin*Win)        = (8, 512)    f32  — exact 8-sublane MXU LHS
    # psi_ref: (Hin*Win, K*Hout*Wout)  = (512, 256)  bf16 — shift-folded dense filter
    # w_ref  : (K*Cout, Cin)           = (12, 4)     f32  — dense (block-diag over groups) mixing
    # b_ref  : (Cout, 1)               = (6, 1)      f32
    # o_ref  : (B*Cout, Hout*Wout)     = (12, 128)   f32  — one lane-dense output block
    y = jnp.dot(x_ref[...], psi_ref[...].astype(jnp.float32),
                preferred_element_type=jnp.float32)               # (B*Cin, K*Hout*Wout) = (8, 256)

    w = w_ref[...]                                                # (12, 4)
    bias_tile = jnp.broadcast_to(b_ref[...], (OUT_CHANNELS, HW_OUT))   # hoisted, computed once

    # Tiny grouped channel/kernel mixing on the VPU as rank-1 broadcast MACs (B*K*Cin = 16 of
    # them); accumulator starts from the broadcast bias, so no separate bias add.
    outs = []
    for b in range(B):                                            # B = 2, fully unrolled
        acc = bias_tile
        for k in range(KSIZE):                                    # KSIZE = 2
            yk = y[b * IN_CHANNELS:(b + 1) * IN_CHANNELS,
                   k * HW_OUT:(k + 1) * HW_OUT]                   # (Cin, 128)
            wk = w[k * OUT_CHANNELS:(k + 1) * OUT_CHANNELS, :]    # (Cout, Cin)
            for c in range(IN_CHANNELS):                          # Cin = 4
                acc = acc + wk[:, c:c + 1] * yk[c:c + 1, :]       # (6,1)*(1,128) -> (6,128) VPU
        outs.append(acc)

    # Single lane-dense (12, 128) store / output DMA.
    o_ref[...] = jnp.concatenate(outs, axis=0).astype(o_ref.dtype)


def disco_conv_s2(x, big_psi_bf16, wk_flat, bias):
    """x: (B, Cin, nlat_in, nlon_in) f32 -> (B, Cout, nlat_out, nlon_out) f32."""
    xf = x.reshape(B * IN_CHANNELS, HW_IN).astype(jnp.float32)    # pure reshape, no transpose
    bias2 = bias.reshape(OUT_CHANNELS, 1).astype(jnp.float32)
    wk2 = wk_flat.astype(jnp.float32)                             # (K*Cout, Cin)

    flops = (2 * (B * IN_CHANNELS) * HW_IN * (KSIZE * HW_OUT)
             + 2 * B * KSIZE * IN_CHANNELS * OUT_CHANNELS * HW_OUT)
    bytes_accessed = (xf.size * 4 + big_psi_bf16.size * 2 + wk2.size * 4
                      + bias2.size * 4 + B * OUT_CHANNELS * HW_OUT * 4)

    out = pl.pallas_call(
        _disco_s2_kernel,
        out_shape=jax.ShapeDtypeStruct((B * OUT_CHANNELS, HW_OUT), jnp.float32),
        in_specs=[
            pl.BlockSpec(memory_space=pltpu.MemorySpace.VMEM),    # x    (8, 512)   f32
            pl.BlockSpec(memory_space=pltpu.MemorySpace.VMEM),    # psi  (512, 256) bf16
            pl.BlockSpec(memory_space=pltpu.MemorySpace.VMEM),    # w    (12, 4)    f32
            pl.BlockSpec(memory_space=pltpu.MemorySpace.VMEM),    # bias (6, 1)     f32
        ],
        out_specs=pl.BlockSpec(memory_space=pltpu.MemorySpace.VMEM),
        cost_estimate=pl.CostEstimate(flops=flops, transcendentals=0,
                                      bytes_accessed=bytes_accessed),
        compiler_params=pltpu.CompilerParams(vmem_limit_bytes=32 * 1024 * 1024),
    )(xf, big_psi_bf16, wk2, bias2)

    return out.reshape(B, OUT_CHANNELS, NLAT_OUT, NLON_OUT)       # pure reshape (NCHW)


# ----------------------------------------------------------------------------
# Pure-JAX reference of the same forward semantics (roll-based, like the module)
# ----------------------------------------------------------------------------
def reference_forward(x, psi_dense, wk_dense, bias):
    outs = []
    for po in range(NLON_OUT):
        xr = jnp.roll(x, -po * PSCALE, axis=-1)
        y = jnp.einsum('khiw,bciw->bkhc', psi_dense, xr)          # (B, K, Hout, Cin)
        outs.append(jnp.einsum('bkhc,koc->boh', y, wk_dense))     # (B, Cout, Hout)
    out = jnp.stack(outs, axis=-1)                                # (B, Cout, Hout, Wout)
    return out + bias.reshape(1, -1, 1, 1)


if __name__ == "__main__":
    key = jax.random.PRNGKey(0)
    kx, kw, kb = jax.random.split(key, 3)

    # Module parameters (weight init follows the module; non-zero bias so the bias path is tested)
    scale = math.sqrt(1.0 / GROUPSIZE / KSIZE)
    weight = scale * jax.random.normal(kw, (OUT_CHANNELS, GROUPSIZE, KSIZE), dtype=jnp.float32)
    bias = 0.1 * jax.random.normal(kb, (OUT_CHANNELS,), dtype=jnp.float32)

    # Expand grouped weight into dense per-k mixing (K, Cout, Cin), block-diagonal over groups
    w_np = np.asarray(weight)
    wk = np.zeros((KSIZE, OUT_CHANNELS, IN_CHANNELS), np.float32)
    ogs = OUT_CHANNELS // GROUPS
    for oc in range(OUT_CHANNELS):
        g = oc // ogs
        for cg in range(GROUPSIZE):
            wk[:, oc, g * GROUPSIZE + cg] = w_np[oc, cg, :]
    wk_dense = jnp.asarray(wk)                                             # reference: (K, Cout, Cin)
    wk_flat = jnp.asarray(wk.reshape(KSIZE * OUT_CHANNELS, IN_CHANNELS))   # kernel:    (K*Cout, Cin)

    psi_dense_np = build_psi_dense()                                       # f32 (K, Hout, Hin, Win)
    # Store psi in bf16 (halves the dominant HBM transfer); the reference uses the SAME
    # bf16-rounded values upcast to f32, so the check validates kernel structure.
    big_psi_bf16 = jnp.asarray(build_big_psi(psi_dense_np), dtype=jnp.bfloat16)  # (512, 256)
    psi_dense_ref = jnp.asarray(psi_dense_np, dtype=jnp.bfloat16).astype(jnp.float32)

    x = jax.random.normal(kx, (B, IN_CHANNELS, NLAT_IN, NLON_IN), dtype=jnp.float32)

    out = jax.block_until_ready(disco_conv_s2(x, big_psi_bf16, wk_flat, bias))
    ref = jax.block_until_ready(reference_forward(x, psi_dense_ref, wk_dense, bias))

    assert out.shape == (B, OUT_CHANNELS, NLAT_OUT, NLON_OUT)
    # f32 accumulation on both sides with identical (bf16-rounded) psi values; tolerance covers
    # MXU pass/accumulation-order differences with ample margin.
    assert jnp.allclose(out, ref, rtol=2e-2, atol=2e-2), "mismatch vs reference"

    print("KERNEL_OK")
</pallas_src>

<mosaic_0001>
module attributes {stable_mosaic.version = 11 : i64} {
  func.func @_disco_s2_kernel(%arg0: memref<8x512xf32, #tpu.memory_space<vmem>>, %arg1: memref<512x256xbf16, #tpu.memory_space<vmem>>, %arg2: memref<12x4xf32, #tpu.memory_space<vmem>>, %arg3: memref<6x1xf32, #tpu.memory_space<vmem>>, %arg4: memref<12x128xf32, #tpu.memory_space<vmem>>) attributes {dimension_semantics = [], scalar_prefetch = 0 : i64, scratch_operands = 0 : i64, tpu.core_type = #tpu.core_type<tc>} {
    %c0 = arith.constant 0 : index
    %c0_0 = arith.constant 0 : index
    %0 = vector.load %arg0[%c0, %c0_0] : memref<8x512xf32, #tpu.memory_space<vmem>>, vector<8x512xf32>
    %c0_1 = arith.constant 0 : index
    %c0_2 = arith.constant 0 : index
    %1 = vector.load %arg1[%c0_1, %c0_2] : memref<512x256xbf16, #tpu.memory_space<vmem>>, vector<512x256xbf16>
    %2 = arith.extf %1 : vector<512x256xbf16> to vector<512x256xf32>
    %cst = arith.constant dense<0.000000e+00> : vector<8x256xf32>
    %3 = tpu.matmul %0, %2, %cst {dimension_numbers = #tpu.dot_dimension_numbers<[1], [0], [0], [1], [0, 0, 1, 1], [], []>} : vector<8x512xf32>, vector<512x256xf32>, vector<8x256xf32> -> vector<8x256xf32>
    %c0_3 = arith.constant 0 : index
    %c0_4 = arith.constant 0 : index
    %4 = vector.load %arg2[%c0_3, %c0_4] : memref<12x4xf32, #tpu.memory_space<vmem>>, vector<12x4xf32>
    %c0_5 = arith.constant 0 : index
    %c0_6 = arith.constant 0 : index
    %5 = vector.load %arg3[%c0_5, %c0_6] : memref<6x1xf32, #tpu.memory_space<vmem>>, vector<6x1xf32>
    %6 = vector.shape_cast %5 : vector<6x1xf32> to vector<6x1xf32>
    %7 = vector.broadcast %6 : vector<6x1xf32> to vector<6x128xf32>
    %8 = vector.extract_strided_slice %3 {offsets = [0, 0], sizes = [4, 128], strides = [1, 1]} : vector<8x256xf32> to vector<4x128xf32>
    %9 = vector.extract_strided_slice %4 {offsets = [0, 0], sizes = [6, 4], strides = [1, 1]} : vector<12x4xf32> to vector<6x4xf32>
    %10 = vector.extract_strided_slice %9 {offsets = [0, 0], sizes = [6, 1], strides = [1, 1]} : vector<6x4xf32> to vector<6x1xf32>
    %11 = vector.extract_strided_slice %8 {offsets = [0, 0], sizes = [1, 128], strides = [1, 1]} : vector<4x128xf32> to vector<1x128xf32>
    %12 = vector.broadcast %10 : vector<6x1xf32> to vector<6x128xf32>
    %13 = vector.broadcast %11 : vector<1x128xf32> to vector<6x128xf32>
    %14 = arith.mulf %12, %13 : vector<6x128xf32>
    %15 = arith.addf %7, %14 : vector<6x128xf32>
    %16 = vector.extract_strided_slice %9 {offsets = [0, 1], sizes = [6, 1], strides = [1, 1]} : vector<6x4xf32> to vector<6x1xf32>
    %17 = vector.extract_strided_slice %8 {offsets = [1, 0], sizes = [1, 128], strides = [1, 1]} : vector<4x128xf32> to vector<1x128xf32>
    %18 = vector.broadcast %16 : vector<6x1xf32> to vector<6x128xf32>
    %19 = vector.broadcast %17 : vector<1x128xf32> to vector<6x128xf32>
    %20 = arith.mulf %18, %19 : vector<6x128xf32>
    %21 = arith.addf %15, %20 : vector<6x128xf32>
    %22 = vector.extract_strided_slice %9 {offsets = [0, 2], sizes = [6, 1], strides = [1, 1]} : vector<6x4xf32> to vector<6x1xf32>
    %23 = vector.extract_strided_slice %8 {offsets = [2, 0], sizes = [1, 128], strides = [1, 1]} : vector<4x128xf32> to vector<1x128xf32>
    %24 = vector.broadcast %22 : vector<6x1xf32> to vector<6x128xf32>
    %25 = vector.broadcast %23 : vector<1x128xf32> to vector<6x128xf32>
    %26 = arith.mulf %24, %25 : vector<6x128xf32>
    %27 = arith.addf %21, %26 : vector<6x128xf32>
    %28 = vector.extract_strided_slice %9 {offsets = [0, 3], sizes = [6, 1], strides = [1, 1]} : vector<6x4xf32> to vector<6x1xf32>
    %29 = vector.extract_strided_slice %8 {offsets = [3, 0], sizes = [1, 128], strides = [1, 1]} : vector<4x128xf32> to vector<1x128xf32>
    %30 = vector.broadcast %28 : vector<6x1xf32> to vector<6x128xf32>
    %31 = vector.broadcast %29 : vector<1x128xf32> to vector<6x128xf32>
    %32 = arith.mulf %30, %31 : vector<6x128xf32>
    %33 = arith.addf %27, %32 : vector<6x128xf32>
    %34 = vector.extract_strided_slice %3 {offsets = [0, 128], sizes = [4, 128], strides = [1, 1]} : vector<8x256xf32> to vector<4x128xf32>
    %35 = vector.extract_strided_slice %4 {offsets = [6, 0], sizes = [6, 4], strides = [1, 1]} : vector<12x4xf32> to vector<6x4xf32>
    %36 = vector.extract_strided_slice %35 {offsets = [0, 0], sizes = [6, 1], strides = [1, 1]} : vector<6x4xf32> to vector<6x1xf32>
    %37 = vector.extract_strided_slice %34 {offsets = [0, 0], sizes = [1, 128], strides = [1, 1]} : vector<4x128xf32> to vector<1x128xf32>
    %38 = vector.broadcast %36 : vector<6x1xf32> to vector<6x128xf32>
    %39 = vector.broadcast %37 : vector<1x128xf32> to vector<6x128xf32>
    %40 = arith.mulf %38, %39 : vector<6x128xf32>
    %41 = arith.addf %33, %40 : vector<6x128xf32>
    %42 = vector.extract_strided_slice %35 {offsets = [0, 1], sizes = [6, 1], strides = [1, 1]} : vector<6x4xf32> to vector<6x1xf32>
    %43 = vector.extract_strided_slice %34 {offsets = [1, 0], sizes = [1, 128], strides = [1, 1]} : vector<4x128xf32> to vector<1x128xf32>
    %44 = vector.broadcast %42 : vector<6x1xf32> to vector<6x128xf32>
    %45 = vector.broadcast %43 : vector<1x128xf32> to vector<6x128xf32>
    %46 = arith.mulf %44, %45 : vector<6x128xf32>
    %47 = arith.addf %41, %46 : vector<6x128xf32>
    %48 = vector.extract_strided_slice %35 {offsets = [0, 2], sizes = [6, 1], strides = [1, 1]} : vector<6x4xf32> to vector<6x1xf32>
    %49 = vector.extract_strided_slice %34 {offsets = [2, 0], sizes = [1, 128], strides = [1, 1]} : vector<4x128xf32> to vector<1x128xf32>
    %50 = vector.broadcast %48 : vector<6x1xf32> to vector<6x128xf32>
    %51 = vector.broadcast %49 : vector<1x128xf32> to vector<6x128xf32>
    %52 = arith.mulf %50, %51 : vector<6x128xf32>
    %53 = arith.addf %47, %52 : vector<6x128xf32>
    %54 = vector.extract_strided_slice %35 {offsets = [0, 3], sizes = [6, 1], strides = [1, 1]} : vector<6x4xf32> to vector<6x1xf32>
    %55 = vector.extract_strided_slice %34 {offsets = [3, 0], sizes = [1, 128], strides = [1, 1]} : vector<4x128xf32> to vector<1x128xf32>
    %56 = vector.broadcast %54 : vector<6x1xf32> to vector<6x128xf32>
    %57 = vector.broadcast %55 : vector<1x128xf32> to vector<6x128xf32>
    %58 = arith.mulf %56, %57 : vector<6x128xf32>
    %59 = arith.addf %53, %58 : vector<6x128xf32>
    %60 = vector.extract_strided_slice %3 {offsets = [4, 0], sizes = [4, 128], strides = [1, 1]} : vector<8x256xf32> to vector<4x128xf32>
    %61 = vector.extract_strided_slice %4 {offsets = [0, 0], sizes = [6, 4], strides = [1, 1]} : vector<12x4xf32> to vector<6x4xf32>
    %62 = vector.extract_strided_slice %61 {offsets = [0, 0], sizes = [6, 1], strides = [1, 1]} : vector<6x4xf32> to vector<6x1xf32>
    %63 = vector.extract_strided_slice %60 {offsets = [0, 0], sizes = [1, 128], strides = [1, 1]} : vector<4x128xf32> to vector<1x128xf32>
    %64 = vector.broadcast %62 : vector<6x1xf32> to vector<6x128xf32>
    %65 = vector.broadcast %63 : vector<1x128xf32> to vector<6x128xf32>
    %66 = arith.mulf %64, %65 : vector<6x128xf32>
    %67 = arith.addf %7, %66 : vector<6x128xf32>
    %68 = vector.extract_strided_slice %61 {offsets = [0, 1], sizes = [6, 1], strides = [1, 1]} : vector<6x4xf32> to vector<6x1xf32>
    %69 = vector.extract_strided_slice %60 {offsets = [1, 0], sizes = [1, 128], strides = [1, 1]} : vector<4x128xf32> to vector<1x128xf32>
    %70 = vector.broadcast %68 : vector<6x1xf32> to vector<6x128xf32>
    %71 = vector.broadcast %69 : vector<1x128xf32> to vector<6x128xf32>
    %72 = arith.mulf %70, %71 : vector<6x128xf32>
    %73 = arith.addf %67, %72 : vector<6x128xf32>
    %74 = vector.extract_strided_slice %61 {offsets = [0, 2], sizes = [6, 1], strides = [1, 1]} : vector<6x4xf32> to vector<6x1xf32>
    %75 = vector.extract_strided_slice %60 {offsets = [2, 0], sizes = [1, 128], strides = [1, 1]} : vector<4x128xf32> to vector<1x128xf32>
    %76 = vector.broadcast %74 : vector<6x1xf32> to vector<6x128xf32>
    %77 = vector.broadcast %75 : vector<1x128xf32> to vector<6x128xf32>
    %78 = arith.mulf %76, %77 : vector<6x128xf32>
    %79 = arith.addf %73, %78 : vector<6x128xf32>
    %80 = vector.extract_strided_slice %61 {offsets = [0, 3], sizes = [6, 1], strides = [1, 1]} : vector<6x4xf32> to vector<6x1xf32>
    %81 = vector.extract_strided_slice %60 {offsets = [3, 0], sizes = [1, 128], strides = [1, 1]} : vector<4x128xf32> to vector<1x128xf32>
    %82 = vector.broadcast %80 : vector<6x1xf32> to vector<6x128xf32>
    %83 = vector.broadcast %81 : vector<1x128xf32> to vector<6x128xf32>
    %84 = arith.mulf %82, %83 : vector<6x128xf32>
    %85 = arith.addf %79, %84 : vector<6x128xf32>
    %86 = vector.extract_strided_slice %3 {offsets = [4, 128], sizes = [4, 128], strides = [1, 1]} : vector<8x256xf32> to vector<4x128xf32>
    %87 = vector.extract_strided_slice %4 {offsets = [6, 0], sizes = [6, 4], strides = [1, 1]} : vector<12x4xf32> to vector<6x4xf32>
    %88 = vector.extract_strided_slice %87 {offsets = [0, 0], sizes = [6, 1], strides = [1, 1]} : vector<6x4xf32> to vector<6x1xf32>
    %89 = vector.extract_strided_slice %86 {offsets = [0, 0], sizes = [1, 128], strides = [1, 1]} : vector<4x128xf32> to vector<1x128xf32>
    %90 = vector.broadcast %88 : vector<6x1xf32> to vector<6x128xf32>
    %91 = vector.broadcast %89 : vector<1x128xf32> to vector<6x128xf32>
    %92 = arith.mulf %90, %91 : vector<6x128xf32>
    %93 = arith.addf %85, %92 : vector<6x128xf32>
    %94 = vector.extract_strided_slice %87 {offsets = [0, 1], sizes = [6, 1], strides = [1, 1]} : vector<6x4xf32> to vector<6x1xf32>
    %95 = vector.extract_strided_slice %86 {offsets = [1, 0], sizes = [1, 128], strides = [1, 1]} : vector<4x128xf32> to vector<1x128xf32>
    %96 = vector.broadcast %94 : vector<6x1xf32> to vector<6x128xf32>
    %97 = vector.broadcast %95 : vector<1x128xf32> to vector<6x128xf32>
    %98 = arith.mulf %96, %97 : vector<6x128xf32>
    %99 = arith.addf %93, %98 : vector<6x128xf32>
    %100 = vector.extract_strided_slice %87 {offsets = [0, 2], sizes = [6, 1], strides = [1, 1]} : vector<6x4xf32> to vector<6x1xf32>
    %101 = vector.extract_strided_slice %86 {offsets = [2, 0], sizes = [1, 128], strides = [1, 1]} : vector<4x128xf32> to vector<1x128xf32>
    %102 = vector.broadcast %100 : vector<6x1xf32> to vector<6x128xf32>
    %103 = vector.broadcast %101 : vector<1x128xf32> to vector<6x128xf32>
    %104 = arith.mulf %102, %103 : vector<6x128xf32>
    %105 = arith.addf %99, %104 : vector<6x128xf32>
    %106 = vector.extract_strided_slice %87 {offsets = [0, 3], sizes = [6, 1], strides = [1, 1]} : vector<6x4xf32> to vector<6x1xf32>
    %107 = vector.extract_strided_slice %86 {offsets = [3, 0], sizes = [1, 128], strides = [1, 1]} : vector<4x128xf32> to vector<1x128xf32>
    %108 = vector.broadcast %106 : vector<6x1xf32> to vector<6x128xf32>
    %109 = vector.broadcast %107 : vector<1x128xf32> to vector<6x128xf32>
    %110 = arith.mulf %108, %109 : vector<6x128xf32>
    %111 = arith.addf %105, %110 : vector<6x128xf32>
    %112 = tpu.concatenate %59, %111 in 0 : vector<6x128xf32>, vector<6x128xf32> -> vector<12x128xf32>
    %c0_7 = arith.constant 0 : index
    %c0_8 = arith.constant 0 : index
    %113 = vector.load %arg4[%c0_7, %c0_8] : memref<12x128xf32, #tpu.memory_space<vmem>>, vector<12x128xf32>
    tpu.vector_store %arg4[%c0_7, %c0_8], %112 {strides = array<i32>} : memref<12x128xf32, #tpu.memory_space<vmem>>, vector<12x128xf32>,
    return
  }
}

</mosaic_0001>

<bundles_post_ra>
// kernel: tpu_custom_call.1
= control target key start
LH: loop header
LB: loop body
LE: loop exit
PB: predicated region body
PF: predicated region fallthrough
CT: control target
= control target key end

     0   :  { %9 = vsyncpa [#allocation3], 0  ;;  %s1118_s0 = inlined_call_operand.hbm [shape: f32[8,512], index: 0, kind: input, shape index: {}]   ;;  %s1119_s1 = inlined_call_operand.hbm [shape: bf16[512,256], index: 1, kind: input, shape index: {}]   ;;  %s1120_s2 = inlined_call_operand.vmem [shape: f32[12,4], index: 2, kind: input, shape index: {}]   ;;  %s1121_s3 = inlined_call_operand.vmem [shape: f32[6,1], index: 3, kind: input, shape index: {}]   ;;  %s1122_s4 = inlined_call_operand.hbm [shape: f32[12,128], index: 4, kind: output, shape index: {}]  }
   0x1   :  { %10 = vsyncpa [#allocation6], 0 }
   0x2   :  { %11 = vsyncpa [#allocation4], 0  ;;  %s981_s15 = smov [#allocation2]   ;;  %s982_s17 = smov [#allocation5]  }
   0x3   :  { %s18_s16 = sshll.u32 %s981_s15, 4  ;;  %s27_s18 = sshll.u32 %s982_s17, 4  ;;  %s19_s16 = int_to_ptr.vmem [resolvable:$true] %s18_s16  ;;  %s1015_s18 = int_to_ptr.vmem [resolvable:$true] %s27_s18 }
   0x4   :  { %s909_s21 = scalar_lea.hbm %s1118_s0, 512 }
   0x5   :  { %p910_p0 = scmp.ne.s32.totalorder %s1118_s0, %s909_s21  ;;  %p913_p1 = scmp.lt.u32.totalorder %s909_s21, %s1118_s0 }
   0x7   :  { %p915_p2 = pnand %p913_p1, %p910_p0 }
   0x9   :  { %918 = shalt.err (!%p915_p2)
}
   0xa   :  { %s919_s26 = scalar_lea.vmem %s19_s16, 512  ;;  %p924_p4 = scmp.lt.s32.totalorder %s19_s16, %s19_s16 }
   0xb   :  { %p920_p3 = scmp.ne.s32.totalorder %s19_s16, %s919_s26  ;;  %p925_p5 = scmp.lt.s32.totalorder %s919_s26, %s919_s26 }
   0xd   :  { %p926_p6 = por %p925_p5, %p924_p4 }
   0xf   :  { %p927_p7 = pnand %p926_p6, %p920_p3 }
  0x11   :  { %930 = shalt.err (!%p927_p7)
}
  0x12   :  { %21 = dma.hbm_to_vmem [thread:$0]  %s1118_s0, 512, %s19_s16, [#allocation3]  }
  0x13   :  { %s931_s5 = scalar_lea.hbm %s1119_s1, 8192 }
  0x14   :  { %p932_p8 = scmp.ne.s32.totalorder %s1119_s1, %s931_s5  ;;  %p935_p9 = scmp.lt.u32.totalorder %s931_s5, %s1119_s1 }
  0x16   :  { %p937_p10 = pnand %p935_p9, %p932_p8 }
  0x18   :  { %940 = shalt.err (!%p937_p10)
}
  0x19   :  { %s941_s10 = scalar_lea.vmem %s1015_s18, 8192  ;;  %p946_p12 = scmp.lt.s32.totalorder %s1015_s18, %s1015_s18 }
  0x1a   :  { %p942_p11 = scmp.ne.s32.totalorder %s1015_s18, %s941_s10  ;;  %p947_p13 = scmp.lt.s32.totalorder %s941_s10, %s941_s10 }
  0x1c   :  { %p948_p0 = por %p947_p13, %p946_p12 }
  0x1e   :  { %p949_p1 = pnand %p948_p0, %p942_p11 }
  0x20   :  { %952 = shalt.err (!%p949_p1)
}
  0x21   :  { %s983_s0 = smov 128   ;;  %s984_s11 = smov 8  }
  0x22   :  { %33 = dma.hbm_to_vmem [thread:$0]  %s1119_s1, 8192, %s1015_s18, [#allocation6], %s983_s0, %s983_s0, %s984_s11  }
  0x23   :  { %975 = dma.done.wait [#allocation3], 512  }
  0x24   :  { %976 = vsyncadd [#allocation3], 4294966784 }
  0x25   :  { %977 = dma.done.wait [#allocation6], 8192  }
  0x26   :  { %978 = vsyncadd [#allocation6], 4294959104  ;;  %v985_v0 = vmov 1   ;;  %v986_v1 = vmov 0   ;;  %v813_v2 = vld [vmem:[#allocation5 + $0x4] ss:$8 sps:$4 sm:$0xff]  }
  0x27   :  { %806 = vset.pattern.permute.xlu1 %v985_v0  ;;  %805 = vset.pattern.permute.xlu0 %v986_v1  ;;  %v815_v3 = vld [vmem:[#allocation5 + $0x104] ss:$8 sps:$4 sm:$0xff]   ;;  %v817_v4 = vld [vmem:[#allocation5] ss:$8 sps:$4 sm:$0xff]   ;;  %v819_v6 = vld [vmem:[#allocation5 + $0x14] ss:$8 sps:$4 sm:$0xff]  }
  0x28   :  { %603 = vmatprep.subr.bf16.mxu1 %v813_v2  ;;  %v818_v5 = vld [vmem:[#allocation5 + $0x100] ss:$8 sps:$4 sm:$0xff]   ;;  %667 = vmatprep.subr.bf16.mxu0 %v815_v3  ;;  %v821_v7 = vld [vmem:[#allocation5 + $0x114] ss:$8 sps:$4 sm:$0xff]   ;;  %v823_v8 = vld [vmem:[#allocation5 + $0x10] ss:$8 sps:$4 sm:$0xff]  }
  0x29   :  { %605 = vmatpush1.bf16.msra.mxu1 %v817_v4  ;;  %669 = vmatpush1.bf16.msra.mxu0 %v818_v5  ;;  %v824_v9 = vld [vmem:[#allocation5 + $0x110] ss:$8 sps:$4 sm:$0xff]   ;;  %v825_v10 = vld [vmem:[#allocation5 + $0x24] ss:$8 sps:$4 sm:$0xff]   ;;  %v829_v12 = vld [vmem:[#allocation5 + $0x20] ss:$8 sps:$4 sm:$0xff]  }
  0x2a   :  { %607 = vmatprep.subr.bf16.mxu1 %v819_v6  ;;  %671 = vmatprep.subr.bf16.mxu0 %v821_v7  ;;  %v827_v11 = vld [vmem:[#allocation5 + $0x124] ss:$8 sps:$4 sm:$0xff]   ;;  %v830_v13 = vld [vmem:[#allocation5 + $0x120] ss:$8 sps:$4 sm:$0xff]   ;;  %v831_v14 = vld [vmem:[#allocation5 + $0x34] ss:$8 sps:$4 sm:$0xff]  }
  0x2b   :  { %v833_v15 = vld [vmem:[#allocation5 + $0x134] ss:$8 sps:$4 sm:$0xff]   ;;  %v835_v16 = vld [vmem:[#allocation5 + $0x30] ss:$8 sps:$4 sm:$0xff]   ;;  %v837_v18 = vld [vmem:[#allocation5 + $0x44] ss:$8 sps:$4 sm:$0xff]  }
  0x2c   :  { %v836_v17 = vld [vmem:[#allocation5 + $0x130] ss:$8 sps:$4 sm:$0xff]   ;;  %v839_v19 = vld [vmem:[#allocation5 + $0x144] ss:$8 sps:$4 sm:$0xff]   ;;  %v841_v20 = vld [vmem:[#allocation5 + $0x40] ss:$8 sps:$4 sm:$0xff]  }
  0x2d   :  { %609 = vmatpush1.bf16.msra.mxu1 %v823_v8  ;;  %673 = vmatpush1.bf16.msra.mxu0 %v824_v9  ;;  %v842_v21 = vld [vmem:[#allocation5 + $0x140] ss:$8 sps:$4 sm:$0xff]   ;;  %v843_v22 = vld [vmem:[#allocation5 + $0x54] ss:$8 sps:$4 sm:$0xff]   ;;  %v847_v24 = vld [vmem:[#allocation5 + $0x50] ss:$8 sps:$4 sm:$0xff]  }
  0x2e   :  { %611 = vmatprep.subr.bf16.mxu1 %v825_v10  ;;  %675 = vmatprep.subr.bf16.mxu0 %v827_v11  ;;  %v845_v23 = vld [vmem:[#allocation5 + $0x154] ss:$8 sps:$4 sm:$0xff]   ;;  %v848_v25 = vld [vmem:[#allocation5 + $0x150] ss:$8 sps:$4 sm:$0xff]   ;;  %v849_v26 = vld [vmem:[#allocation5 + $0x64] ss:$8 sps:$4 sm:$0xff]  }
  0x2f   :  { %v851_v27 = vld [vmem:[#allocation5 + $0x164] ss:$8 sps:$4 sm:$0xff]   ;;  %v853_v28 = vld [vmem:[#allocation5 + $0x60] ss:$8 sps:$4 sm:$0xff]   ;;  %v855_v30 = vld [vmem:[#allocation5 + $0x74] ss:$8 sps:$4 sm:$0xff]  }
  0x30   :  { %v854_v29 = vld [vmem:[#allocation5 + $0x160] ss:$8 sps:$4 sm:$0xff]   ;;  %v857_v31 = vld [vmem:[#allocation5 + $0x174] ss:$8 sps:$4 sm:$0xff]   ;;  %v859_v32 = vld [vmem:[#allocation5 + $0x70] ss:$8 sps:$4 sm:$0xff]  }
  0x31   :  { %613 = vmatpush1.bf16.msra.mxu1 %v829_v12  ;;  %677 = vmatpush1.bf16.msra.mxu0 %v830_v13  ;;  %v860_v33 = vld [vmem:[#allocation5 + $0x170] ss:$8 sps:$4 sm:$0xff]   ;;  %v861_v34 = vld [vmem:[#allocation5 + $0x84] ss:$8 sps:$4 sm:$0xff]   ;;  %v865_v36 = vld [vmem:[#allocation5 + $0x80] ss:$8 sps:$4 sm:$0xff]   ;;  %v395_v13 = vlaneseq }
  0x32   :  { %615 = vmatprep.subr.bf16.mxu1 %v831_v14  ;;  %679 = vmatprep.subr.bf16.mxu0 %v833_v15  ;;  %v863_v35 = vld [vmem:[#allocation5 + $0x184] ss:$8 sps:$4 sm:$0xff]   ;;  %v866_v37 = vld [vmem:[#allocation5 + $0x180] ss:$8 sps:$4 sm:$0xff]   ;;  %v867_v38 = vld [vmem:[#allocation5 + $0x94] ss:$8 sps:$4 sm:$0xff]  }
  0x33   :  { %v869_v39 = vld [vmem:[#allocation5 + $0x194] ss:$8 sps:$4 sm:$0xff]   ;;  %v871_v40 = vld [vmem:[#allocation5 + $0x90] ss:$8 sps:$4 sm:$0xff]   ;;  %v873_v42 = vld [vmem:[#allocation5 + $0xa4] ss:$8 sps:$4 sm:$0xff]  }
  0x34   :  { %v872_v41 = vld [vmem:[#allocation5 + $0x190] ss:$8 sps:$4 sm:$0xff]   ;;  %v875_v43 = vld [vmem:[#allocation5 + $0x1a4] ss:$8 sps:$4 sm:$0xff]   ;;  %v877_v44 = vld [vmem:[#allocation5 + $0xa0] ss:$8 sps:$4 sm:$0xff]  }
  0x35   :  { %617 = vmatpush1.bf16.msra.mxu1 %v835_v16  ;;  %681 = vmatpush1.bf16.msra.mxu0 %v836_v17  ;;  %v878_v45 = vld [vmem:[#allocation5 + $0x1a0] ss:$8 sps:$4 sm:$0xff]   ;;  %v879_v46 = vld [vmem:[#allocation5 + $0xb4] ss:$8 sps:$4 sm:$0xff]   ;;  %v883_v50 = vld [vmem:[#allocation5 + $0xb0] ss:$8 sps:$4 sm:$0xff]  }
  0x36   :  { %619 = vmatprep.subr.bf16.mxu1 %v837_v18  ;;  %683 = vmatprep.subr.bf16.mxu0 %v839_v19  ;;  %v881_v47 = vld [vmem:[#allocation5 + $0x1b4] ss:$8 sps:$4 sm:$0xff]   ;;  %v45_v48 = vld [vmem:[#allocation2 + $0x8] sm:$0xff]  ;;  %v884_v51 = vld [vmem:[#allocation5 + $0x1b0] ss:$8 sps:$4 sm:$0xff]   ;;  %v987_v60 = vmov 2  }
  0x37   :  { %304 = vmatprep.mubr.f32.mxu1 %v45_v48  ;;  %v47_v49 = vld [vmem:[#allocation2 + $0x18] sm:$0xff]  ;;  %v382_v52 = vld [vmem:[%s1120_s2] sm:$0xff]  ;;  %v383_v63 = vld [vmem:[%s1120_s2 + $0x8] sm:$0xf]  ;;  %v988_v3 = vmov 3   ;;  %v1066_v16 = vshrl.u32 %v395_v13, 7 }
  0x38   :  { %v885_v53 = vld [vmem:[#allocation5 + $0xc4] ss:$8 sps:$4 sm:$0xff]   ;;  %375 = vmatprep.mubr.f32.mxu0 %v47_v49  ;;  %402 = vperm.xlu1 %806, %v382_v52   ;;  %v889_v55 = vld [vmem:[#allocation5 + $0xc0] ss:$8 sps:$4 sm:$0xff]   ;;  %v891_v58 = vld [vmem:[#allocation5 + $0xd4] ss:$8 sps:$4 sm:$0xff]  }
  0x39   :  { %621 = vmatpush1.bf16.msra.mxu1 %v841_v20  ;;  %685 = vmatpush1.bf16.msra.mxu0 %v842_v21  ;;  %v887_v54 = vld [vmem:[#allocation5 + $0x1c4] ss:$8 sps:$4 sm:$0xff]   ;;  %v890_v56 = vld [vmem:[#allocation5 + $0x1c0] ss:$8 sps:$4 sm:$0xff]   ;;  %v893_v59 = vld [vmem:[#allocation5 + $0x1d4] ss:$8 sps:$4 sm:$0xff]  }
  0x3a   :  { %623 = vmatprep.subr.bf16.mxu1 %v843_v22  ;;  %687 = vmatprep.subr.bf16.mxu0 %v845_v23  ;;  %v384_v57 = vld [vmem:[%s1121_s3] sm:$0x3f]  ;;  %v895_v61 = vld [vmem:[#allocation5 + $0xd0] ss:$8 sps:$4 sm:$0xff]   ;;  %v903_v6 = vld [vmem:[#allocation5 + $0xf4] ss:$8 sps:$4 sm:$0xff]  }
  0x3b   :  { %392 = vperm.xlu0 %805, %v382_v52   ;;  %v896_v62 = vld [vmem:[#allocation5 + $0x1d0] ss:$8 sps:$4 sm:$0xff]   ;;  %v897_v1 = vld [vmem:[#allocation5 + $0xe4] ss:$8 sps:$4 sm:$0xff]   ;;  %v901_v4 = vld [vmem:[#allocation5 + $0xe0] ss:$8 sps:$4 sm:$0xff]  }
  0x3c   :  { %807 = vset.pattern.permute.xlu1 %v987_v60  ;;  %v899_v2 = vld [vmem:[#allocation5 + $0x1e4] ss:$8 sps:$4 sm:$0xff]   ;;  %v902_v5 = vld [vmem:[#allocation5 + $0x1e0] ss:$8 sps:$4 sm:$0xff]   ;;  %v905_v7 = vld [vmem:[#allocation5 + $0x1f4] ss:$8 sps:$4 sm:$0xff]  }
  0x3d   :  { %625 = vmatpush1.bf16.msra.mxu1 %v847_v24  ;;  %689 = vmatpush1.bf16.msra.mxu0 %v848_v25  ;;  %v907_v8 = vld [vmem:[#allocation5 + $0xf0] ss:$8 sps:$4 sm:$0xff]   ;;  %v44_v10 = vld [vmem:[#allocation2] sm:$0xff]  ;;  %v427_v19 = vsub.s32 3, %v1066_v16  ;;  %v521_v20 = vsub.s32 7, %v1066_v16  ;;  %v397_v21 = vsub.s32 0, %v1066_v16 }
  0x3e   :  { %627 = vmatprep.subr.bf16.mxu1 %v849_v26  ;;  %691 = vmatprep.subr.bf16.mxu0 %v851_v27  ;;  %v908_v9 = vld [vmem:[#allocation5 + $0x1f0] ss:$8 sps:$4 sm:$0xff]   ;;  %v407_v22 = vsub.s32 1, %v1066_v16  ;;  %v417_v25 = vsub.s32 2, %v1066_v16  ;;  %vm444_vm0 = vcmask 1041408   ;;  %s989_s2 = smov [#allocation7]  }
  0x3f   :  { %412 = vperm.xlu1 %807, %v382_v52   ;;  %387 = vperm.xlu0 %805, %v384_v57   ;;  %v46_v11 = vld [vmem:[#allocation2 + $0x10] sm:$0xff]  ;;  %s589_s3 = sshll.u32 %s989_s2, 4  ;;  %vm580_vm1 = vcmask 1045504   ;;  %s590_s3 = int_to_ptr.vmem [resolvable:$true] %s589_s3 }
  0x40   :  { %s953_s19 = scalar_lea.vmem %s590_s3, 256  ;;  %p958_p3 = scmp.lt.s32.totalorder %s590_s3, %s590_s3 }
  0x41   :  { %629 = vmatpush1.bf16.msra.mxu1 %v853_v28  ;;  %693 = vmatpush1.bf16.msra.mxu0 %v854_v29  ;;  %p954_p2 = scmp.ne.s32.totalorder %s590_s3, %s953_s19  ;;  %p959_p4 = scmp.lt.s32.totalorder %s953_s19, %s953_s19 }
  0x42   :  { %631 = vmatprep.subr.bf16.mxu1 %v855_v30  ;;  %695 = vmatprep.subr.bf16.mxu0 %v857_v31 }
  0x43   :  { %808 = vset.pattern.permute.xlu1 %v988_v3  ;;  %433 = vperm.xlu0 %805, %v383_v63   ;;  %p960_p5 = por %p959_p4, %p958_p3 }
  0x44   :  { %422 = vperm.xlu1 %808, %v382_v52  }
  0x45   :  { %633 = vmatpush1.bf16.msra.mxu1 %v859_v32  ;;  %697 = vmatpush1.bf16.msra.mxu0 %v860_v33  ;;  %p961_p6 = pnand %p960_p5, %p954_p2 }
  0x46   :  { %635 = vmatprep.subr.bf16.mxu1 %v861_v34  ;;  %699 = vmatprep.subr.bf16.mxu0 %v863_v35 }
  0x47   :  { %809 = vset.pattern.permute.xlu0 %v985_v0 }
  0x48   :  { %810 = vset.pattern.permute.xlu1 %v987_v60  ;;  %451 = vperm.xlu0 %809, %v383_v63  }
  0x49   :  { %637 = vmatpush1.bf16.msra.mxu1 %v865_v36  ;;  %701 = vmatpush1.bf16.msra.mxu0 %v866_v37 }
  0x4a   :  { %639 = vmatprep.subr.bf16.mxu1 %v867_v38  ;;  %703 = vmatprep.subr.bf16.mxu0 %v869_v39 }
  0x4b   :  { %468 = vperm.xlu1 %810, %v383_v63  }
  0x4c   :  { %812 = vset.pattern.permute.xlu0 %v988_v3 }
  0x4d   :  { %641 = vmatpush1.bf16.msra.mxu1 %v871_v40  ;;  %705 = vmatpush1.bf16.msra.mxu0 %v872_v41  ;;  %v503_v40 = vsub.s32 4, %v1066_v16 }
  0x4e   :  { %643 = vmatprep.subr.bf16.mxu1 %v873_v42  ;;  %707 = vmatprep.subr.bf16.mxu0 %v875_v43 }
  0x4f   :  { %811 = vset.pattern.permute.xlu1 %v988_v3 }
  0x50   :  { %485 = vperm.xlu1 %811, %v383_v63  }
  0x51   :  { %645 = vmatpush1.bf16.msra.mxu1 %v877_v44  ;;  %709 = vmatpush1.bf16.msra.mxu0 %v878_v45  ;;  %v509_v44 = vsub.s32 5, %v1066_v16  ;;  %v515_v45 = vsub.s32 6, %v1066_v16 }
  0x52   :  { %647 = vmatprep.subr.bf16.mxu1 %v879_v46  ;;  %711 = vmatprep.subr.bf16.mxu0 %v881_v47 }
  0x55   :  { %649 = vmatpush1.bf16.msra.mxu1 %v883_v50  ;;  %713 = vmatpush1.bf16.msra.mxu0 %v884_v51 }
  0x56   :  { %651 = vmatprep.subr.bf16.mxu1 %v885_v53  ;;  %715 = vmatprep.subr.bf16.mxu0 %v887_v54 }
  0x59   :  { %653 = vmatpush1.bf16.msra.mxu1 %v889_v55  ;;  %717 = vmatpush1.bf16.msra.mxu0 %v890_v56 }
  0x5a   :  { %655 = vmatprep.subr.bf16.mxu1 %v891_v58  ;;  %719 = vmatprep.subr.bf16.mxu0 %v893_v59 }
  0x5d   :  { %657 = vmatpush1.bf16.msra.mxu1 %v895_v61  ;;  %721 = vmatpush1.bf16.msra.mxu0 %v896_v62 }
  0x5e   :  { %659 = vmatprep.subr.bf16.mxu1 %v897_v1  ;;  %723 = vmatprep.subr.bf16.mxu0 %v899_v2 }
  0x61   :  { %661 = vmatpush1.bf16.msra.mxu1 %v901_v4  ;;  %725 = vmatpush1.bf16.msra.mxu0 %v902_v5 }
  0x62   :  { %663 = vmatprep.subr.bf16.mxu1 %v903_v6  ;;  %727 = vmatprep.subr.bf16.mxu0 %v905_v7 }
  0x65   :  { %665 = vmatpush1.bf16.msra.mxu1 %v907_v8  ;;  %729 = vmatpush1.bf16.msra.mxu0 %v908_v9 }
  0x68   :  { %305 = vmatmul.mubr.f32.vlgmr.msra.gmra.mrb[0].mxu1 %v44_v10  ;;  %376 = vmatmul.mubr.f32.vlgmr.msra.gmra.mrb[0].mxu0 %v46_v11 }
  0xb7   :  { %v1060_v12 = vpop.permute.xlu1 %402 }
  0xba   :  { %v1064_v14 = vpop.permute.xlu0 %392 }
  0xbe   :  { %v1062_v0 = vpop.permute.xlu1 %412  ;;  %v388_v17 = vpop.permute.xlu0 %387 }
  0xc2   :  { %v434_v34 = vpop.permute.xlu0 %433 }
  0xc3   :  { %v423_v15 = vpop.permute.xlu1 %422 }
  0xc7   :  { %v452_v53 = vpop.permute.xlu0 %451 }
  0xca   :  { %v1068_v18 = vpop.permute.xlu1 %468 }
  0xcf   :  { %v486_v39 = vpop.permute.xlu1 %485 }
 0x13b   :  { %v306_v23 = vpop.f32.mrb[0].mxu1  ;;  %v377_v24 = vpop.f32.mrb[0].mxu0 }
 0x13c   :  { %v378_v26 = vadd.f32 %v377_v24, %v306_v23  ;;  %v308_v27 = vpop.f32.mrb[1].mxu1  ;;  %v379_v28 = vpop.f32.mrb[1].mxu0 }
 0x13d   :  { %v380_v29 = vadd.f32 %v379_v28, %v308_v27 }
 0x13e   :  { %v428_v30 = vrot.slane %v378_v26, %v427_v19  ;;  %v522_v31 = vrot.slane %v378_v26, %v521_v20  ;;  %v398_v32 = vrot.slane %v378_v26, %v397_v21  ;;  %v408_v33 = vrot.slane %v378_v26, %v407_v22 }
 0x13f   :  { %v491_v35 = vrot.slane %v380_v29, %v427_v19  ;;  %v567_v36 = vrot.slane %v380_v29, %v521_v20  ;;  %v418_v37 = vrot.slane %v378_v26, %v417_v25  ;;  %v439_v38 = vrot.slane %v380_v29, %v397_v21 }
 0x140   :  { %v399_v41 = vmul.f32 %v398_v32, %v1064_v14  ;;  %v429_v42 = vmul.f32 %v428_v30, %v423_v15  ;;  %v409_v47 = vmul.f32 %v408_v33, %v1060_v12  ;;  %v523_v51 = vmul.f32 %v522_v31, %v423_v15 }
 0x141   :  { %v492_v43 = vmul.f32 %v491_v35, %v423_v15  ;;  %v440_v48 = vmul.f32 %v439_v38, %v1064_v14  ;;  %v441_v49 = vmul.f32 %v439_v38, %v434_v34  ;;  %v493_v50 = vmul.f32 %v491_v35, %v486_v39 }
 0x142   :  { %v400_v46 = vadd.f32 %v399_v41, %v388_v17  ;;  %v1081_v52 = vmul.f32 %v567_v36, %v423_v15  ;;  %v419_v54 = vmul.f32 %v418_v37, %v1062_v0  ;;  %v457_v58 = vrot.slane %v380_v29, %v407_v22 }
 0x143   :  { %v445_v56 = vrot.slane %v440_v48, 6  ;;  %v446_v57 = vrot.slane %v441_v49, 6  ;;  %v496_v59 = vrot.slane %v492_v43, 6  ;;  %v569_v60 = vmul.f32 %v567_v36, %v486_v39 }
 0x144   :  { %v410_v55 = vadd.f32 %v409_v47, %v400_v46  ;;  %v474_v61 = vrot.slane %v380_v29, %v417_v25  ;;  %v504_v62 = vrot.slane %v378_v26, %v503_v40  ;;  %v458_v2 = vmul.f32 %v457_v58, %v1060_v12 }
 0x145   :  { %v447_v1 = vsel %vm444_vm0, %v445_v56, %v446_v57  ;;  %v459_v3 = vmul.f32 %v457_v58, %v452_v53  ;;  %v510_v7 = vrot.slane %v378_v26, %v509_v44  ;;  %v516_v11 = vrot.slane %v378_v26, %v515_v45 }
 0x146   :  { %v420_v63 = vadd.f32 %v419_v54, %v410_v55  ;;  %v475_v4 = vmul.f32 %v474_v61, %v1062_v0  ;;  %v476_v5 = vmul.f32 %v474_v61, %v1068_v18  ;;  %v505_v6 = vmul.f32 %v504_v62, %v1064_v14 }
 0x147   :  { %v462_v9 = vrot.slane %v458_v2, 6  ;;  %v463_v10 = vrot.slane %v459_v3, 6  ;;  %v511_v19 = vmul.f32 %v510_v7, %v1060_v12  ;;  %v497_v20 = vrot.slane %v493_v50, 6 }
 0x148   :  { %v430_v8 = vadd.f32 %v429_v42, %v420_v63  ;;  %v479_v13 = vrot.slane %v475_v4, 6  ;;  %v480_v15 = vrot.slane %v476_v5, 6  ;;  %v506_v16 = vadd.f32 %v505_v6, %v388_v17 }
 0x149   :  { %v464_v22 = vsel %vm444_vm0, %v462_v9, %v463_v10  ;;  %v528_v23 = vrot.slane %v380_v29, %v503_v40  ;;  %v517_v25 = vmul.f32 %v516_v11, %v1062_v0  ;;  %v541_v27 = vrot.slane %v380_v29, %v509_v44 }
 0x14a   :  { %v449_v21 = vadd.f32 %v447_v1, %v430_v8  ;;  %v512_v24 = vadd.f32 %v511_v19, %v506_v16  ;;  %v554_v28 = vrot.slane %v380_v29, %v515_v45  ;;  %v481_v31 = vsel %vm444_vm0, %v479_v13, %v480_v15 }
 0x14b   :  { %v529_v26 = vmul.f32 %v528_v23, %v1064_v14  ;;  %v530_v32 = vmul.f32 %v528_v23, %v434_v34  ;;  %v542_v17 = vmul.f32 %v541_v27, %v1060_v12  ;;  %v543_v35 = vmul.f32 %v541_v27, %v452_v53 }
 0x14c   :  { %v466_v30 = vadd.f32 %v464_v22, %v449_v21  ;;  %v518_v33 = vadd.f32 %v517_v25, %v512_v24  ;;  %v555_v36 = vmul.f32 %v554_v28, %v1062_v0  ;;  %v556_v40 = vmul.f32 %v554_v28, %v1068_v18 }
 0x14d   :  { %v533_v38 = vrot.slane %v529_v26, 6  ;;  %v534_v39 = vrot.slane %v530_v32, 6  ;;  %v498_v41 = vsel %vm444_vm0, %v496_v59, %v497_v20  ;;  %v546_v42 = vrot.slane %v542_v17, 6 }
 0x14e   :  { %v483_v37 = vadd.f32 %v481_v31, %v466_v30  ;;  %v524_v29 = vadd.f32 %v523_v51, %v518_v33  ;;  %v547_v43 = vrot.slane %v543_v35, 6  ;;  %v559_v34 = vrot.slane %v555_v36, 6 }
 0x14f   :  { %v535_v44 = vsel %vm444_vm0, %v533_v38, %v534_v39  ;;  %v560_v45 = vrot.slane %v556_v40, 6  ;;  %v572_v12 = vrot.slane %v1081_v52, 6  ;;  %v573_v47 = vrot.slane %v569_v60, 6 }
 0x150   :  { %v500_v14 = vadd.f32 %v498_v41, %v483_v37  ;;  %v537_v46 = vadd.f32 %v535_v44, %v524_v29  ;;  %v548_v0 = vsel %vm444_vm0, %v546_v42, %v547_v43 }
 0x151   :  { %v561_v49 = vsel %vm444_vm0, %v559_v34, %v560_v45  ;;  %v574_v50 = vsel %vm444_vm0, %v572_v12, %v573_v47 }
 0x152   :  { %v550_v48 = vadd.f32 %v548_v0, %v537_v46 }
 0x154   :  { %v563_v18 = vadd.f32 %v561_v49, %v550_v48 }
 0x156   :  { %v576_v51 = vadd.f32 %v574_v50, %v563_v18 }
 0x158   :  { %v578_v53 = vrot.slane %v576_v51, 2 }
 0x15a   :  { %v581_v54 = vsel %vm580_vm1, %v500_v14, %v578_v53  ;;  %583 = vst [vmem:[#allocation7 + $0x8] sm:$0xf] %v578_v53 }
 0x15b   :  { %582 = vst [vmem:[#allocation7] sm:$0xff] %v581_v54 }
 0x15c   :  { %964 = shalt.err (!%p961_p6)
}
 0x15d   :  { %s965_s22 = scalar_lea.hbm %s1122_s4, 256 }
 0x15e   :  { %p966_p7 = scmp.ne.s32.totalorder %s1122_s4, %s965_s22  ;;  %p969_p8 = scmp.lt.u32.totalorder %s965_s22, %s1122_s4 }
 0x160   :  { %p971_p9 = pnand %p969_p8, %p966_p7 }
 0x162   :  { %974 = shalt.err (!%p971_p9)
}
 0x163   :  { %595 = dma.vmem_to_hbm [thread:$0]  %s590_s3, 256, %s1122_s4, [#allocation4], %s983_s0, %s983_s0, %s984_s11  }
 0x164   :  { %979 = dma.done.wait [#allocation4], 256  }
 0x165   :  { %980 = vsyncadd [#allocation4], 4294967040 }
 0x166   :  { %599 = vsyncpa [#allocation3], 1 }
 0x167   :  { %600 = vsyncpa [#allocation6], 1 }
 0x168   :  { %601 = vsyncpa [#allocation4], 1 }

</bundles_post_ra>
